<compile_context>
chip_gen: v7x
topology: tpu7x:2x2x1
jax: 0.10.0
libtpu: 0.0.40
codegen_flags: <defaults>
</compile_context>

<pallas_src>
import jax
import jax.numpy as jnp
from jax.experimental import pallas as pl
from jax.experimental.pallas import tpu as pltpu


_LANES = 128      # vreg lane width (last dim)
_SUBLANES = 8     # f32 sublane count (second-to-last dim)


def _round_up(n, m):
    return ((n + m - 1) // m) * m


def _pick_row_tile(batch, tb_max=1024, min_steps=4):
    """Row tile: multiple of 8, capped at tb_max, and small enough that the batch
    grid has >= min_steps steps (keeps both v7x TensorCores busy and balanced)."""
    tb = _round_up(pl.cdiv(batch, min_steps), _SUBLANES)
    tb = min(tb, _round_up(tb_max, _SUBLANES))
    return max(tb, _SUBLANES)


# ---------------------------------------------------------------------------
# One-time parameter preparation (hoisted out of the per-call path).
# ---------------------------------------------------------------------------

def prepare_classifier_params(weight, bias):
    """nn.Linear(128, num_class) -> MXU-ready params.

    weight: (num_class, K) ; bias: (num_class,)
    Returns (wt_pad: (K, nc_pad) lane-padded transposed weight, b_row: (1, num_class)).
    """
    num_class, k = weight.shape
    nc_pad = _round_up(max(num_class, _LANES), _LANES)
    wt_pad = (jnp.zeros((k, nc_pad), dtype=jnp.float32)
              .at[:, :num_class].set(weight.T.astype(jnp.float32)))
    b_row = bias.astype(jnp.float32).reshape(1, num_class)
    return wt_pad, b_row


def prepare_projection_head_params(w_proj, b_proj, w_cls, b_cls):
    """Projection_Module.proj (Linear 576->128) + classifier (Linear 128->num_class)."""
    wpT = w_proj.T.astype(jnp.float32)                  # (576, 128)
    bp_row = b_proj.astype(jnp.float32).reshape(1, -1)  # (1, 128)
    wcT_pad, bc_row = prepare_classifier_params(w_cls, b_cls)
    return wpT, bp_row, wcT_pad, bc_row


# ---------------------------------------------------------------------------
# Kernels
# ---------------------------------------------------------------------------

def _classifier_kernel(x_ref, wt_ref, b_ref, o_ref):
    # x_ref : (tb, 128)       activation row tile (pipelined, ragged last block ok)
    # wt_ref: (128, nc_pad)   lane-padded transposed weight (grid-invariant, VMEM-resident)
    # b_ref : (1, num_class)  bias row                      (grid-invariant, VMEM-resident)
    # o_ref : (tb, num_class) output tile (masked store, tiny HBM writeback)
    acc = jnp.dot(x_ref[...], wt_ref[...], preferred_element_type=jnp.float32)
    nc = o_ref.shape[-1]
    # Bias add rides a free VALU slot under the MXU/store path.
    o_ref[...] = (acc[:, :nc] + b_ref[...]).astype(o_ref.dtype)


def _projection_head_kernel(f_ref, wpT_ref, bp_ref, wcT_ref, bc_ref, o_ref):
    # Fused: h = feat @ Wp^T + bp ; logits = h @ Wc^T + bc.
    # The (tb, 128) intermediate `h` stays in vregs/VMEM -> no HBM round trip.
    h = jnp.dot(f_ref[...], wpT_ref[...], preferred_element_type=jnp.float32) + bp_ref[...]
    acc = jnp.dot(h, wcT_ref[...], preferred_element_type=jnp.float32)
    nc = o_ref.shape[-1]
    o_ref[...] = (acc[:, :nc] + bc_ref[...]).astype(o_ref.dtype)


# ---------------------------------------------------------------------------
# Wrappers
# ---------------------------------------------------------------------------

def pseudo_classifier_forward(spec, wt_pad, b_row, *, tb_max=1024, min_steps=4):
    """Pseudo_classifier: Flatten -> Linear(128, num_class).

    spec: (B, ...) with prod(...) == 128.  wt_pad/b_row from prepare_classifier_params.
    """
    B = spec.shape[0]
    x = spec.reshape(B, -1).astype(jnp.float32)   # nn.Flatten (metadata-only reshape)
    K = x.shape[1]
    nc_pad = wt_pad.shape[-1]
    num_class = b_row.shape[-1]
    assert K == wt_pad.shape[0], "Linear in_features mismatch"

    tb = _pick_row_tile(B, tb_max=tb_max, min_steps=min_steps)
    grid = (pl.cdiv(B, tb),)   # ragged last block: no batch padding, no output slice

    cost = pl.CostEstimate(
        flops=2 * B * K * nc_pad,
        transcendentals=0,
        bytes_accessed=4 * (B * K + K * nc_pad + num_class + B * num_class),
    )

    return pl.pallas_call(
        _classifier_kernel,
        out_shape=jax.ShapeDtypeStruct((B, num_class), jnp.float32),
        grid=grid,
        in_specs=[
            pl.BlockSpec((tb, K), lambda i: (i, 0)),          # pipelined activations
            pl.BlockSpec((K, nc_pad), lambda i: (0, 0)),      # weight stays resident
            pl.BlockSpec((1, num_class), lambda i: (0, 0)),   # bias stays resident
        ],
        out_specs=pl.BlockSpec((tb, num_class), lambda i: (i, 0)),
        compiler_params=pltpu.CompilerParams(
            dimension_semantics=("parallel",),   # batch tiles independent -> megacore
        ),
        cost_estimate=cost,
    )(x, wt_pad, b_row)


def projection_head_forward(feature, wpT, bp_row, wcT_pad, bc_row,
                            *, tb_max=1024, min_steps=4):
    """Fused Projection_Module.proj + Pseudo_classifier.

    feature: (B, ...) with prod(...) == 576 (concat of pooled SE features and metadata).
    """
    B = feature.shape[0]
    f = feature.reshape(B, -1).astype(jnp.float32)   # (B, 576)
    Kf = f.shape[1]
    Kh = wpT.shape[1]            # 128
    nc_pad = wcT_pad.shape[-1]
    num_class = bc_row.shape[-1]
    assert Kf == wpT.shape[0] and Kh == wcT_pad.shape[0]

    tb = _pick_row_tile(B, tb_max=tb_max, min_steps=min_steps)
    grid = (pl.cdiv(B, tb),)

    cost = pl.CostEstimate(
        flops=2 * B * Kf * Kh + 2 * B * Kh * nc_pad,
        transcendentals=0,
        bytes_accessed=4 * (B * Kf + Kf * Kh + Kh + Kh * nc_pad + num_class
                            + B * num_class),
    )

    return pl.pallas_call(
        _projection_head_kernel,
        out_shape=jax.ShapeDtypeStruct((B, num_class), jnp.float32),
        grid=grid,
        in_specs=[
            pl.BlockSpec((tb, Kf), lambda i: (i, 0)),         # pipelined feature tiles
            pl.BlockSpec((Kf, Kh), lambda i: (0, 0)),         # proj weight, resident
            pl.BlockSpec((1, Kh), lambda i: (0, 0)),          # proj bias, resident
            pl.BlockSpec((Kh, nc_pad), lambda i: (0, 0)),     # classifier weight, resident
            pl.BlockSpec((1, num_class), lambda i: (0, 0)),   # classifier bias, resident
        ],
        out_specs=pl.BlockSpec((tb, num_class), lambda i: (i, 0)),
        compiler_params=pltpu.CompilerParams(
            dimension_semantics=("parallel",),
        ),
        cost_estimate=cost,
    )(f, wpT, bp_row, wcT_pad, bc_row)


# ---------------------------------------------------------------------------
# Self-test
# ---------------------------------------------------------------------------

if __name__ == "__main__":
    num_class = 5           # Branch default num_class
    key = jax.random.PRNGKey(0)
    ks = jax.random.split(key, 8)

    # nn.Linear(128, num_class) params (classifier) -- torch default init range.
    bound_c = 1.0 / jnp.sqrt(128.0)
    w_cls = jax.random.uniform(ks[0], (num_class, 128), minval=-bound_c, maxval=bound_c,
                               dtype=jnp.float32)
    b_cls = jax.random.uniform(ks[1], (num_class,), minval=-bound_c, maxval=bound_c,
                               dtype=jnp.float32)
    # nn.Linear(576, 128) params (Projection_Module.proj).
    bound_p = 1.0 / jnp.sqrt(576.0)
    w_proj = jax.random.uniform(ks[2], (128, 576), minval=-bound_p, maxval=bound_p,
                                dtype=jnp.float32)
    b_proj = jax.random.uniform(ks[3], (128,), minval=-bound_p, maxval=bound_p,
                                dtype=jnp.float32)

    # One-time (model-init) parameter prep -- hoisted out of the per-call path.
    wcT_pad, bc_row = prepare_classifier_params(w_cls, b_cls)
    wpT, bp_row, wcT_pad2, bc_row2 = prepare_projection_head_params(
        w_proj, b_proj, w_cls, b_cls)

    # --- Standalone classifier head: (B, 1, 128) feature -> (B, num_class) logits.
    B = 2
    spec = jax.random.normal(ks[4], (B, 1, 128), dtype=jnp.float32)
    out = jax.block_until_ready(pseudo_classifier_forward(spec, wcT_pad, bc_row))
    ref = spec.reshape(B, -1) @ w_cls.T + b_cls
    assert out.shape == (B, num_class)
    assert jnp.allclose(out, ref, atol=1e-5, rtol=1e-5)

    # Ragged multi-step grid (no wrapper batch padding, no post-kernel slicing).
    B2 = 1029
    spec2 = jax.random.normal(ks[5], (B2, 1, 128), dtype=jnp.float32)
    out2 = jax.block_until_ready(pseudo_classifier_forward(spec2, wcT_pad, bc_row))
    ref2 = spec2.reshape(B2, -1) @ w_cls.T + b_cls
    assert out2.shape == (B2, num_class)
    assert jnp.allclose(out2, ref2, atol=1e-5, rtol=1e-5)

    # --- Fused proj(576->128) + classifier: (B, 1, 576) concat feature -> logits.
    feat = jax.random.normal(ks[6], (B, 1, 576), dtype=jnp.float32)
    out3 = jax.block_until_ready(
        projection_head_forward(feat, wpT, bp_row, wcT_pad2, bc_row2))
    h_ref = feat.reshape(B, -1) @ w_proj.T + b_proj
    ref3 = h_ref @ w_cls.T + b_cls
    assert out3.shape == (B, num_class)
    assert jnp.allclose(out3, ref3, atol=1e-4, rtol=1e-4)

    # Fused path on the ragged batch as well.
    feat2 = jax.random.normal(ks[7], (B2, 1, 576), dtype=jnp.float32)
    out4 = jax.block_until_ready(
        projection_head_forward(feat2, wpT, bp_row, wcT_pad2, bc_row2))
    ref4 = (feat2.reshape(B2, -1) @ w_proj.T + b_proj) @ w_cls.T + b_cls
    assert out4.shape == (B2, num_class)
    assert jnp.allclose(out4, ref4, atol=1e-4, rtol=1e-4)

    print("KERNEL_OK")
</pallas_src>

<mosaic_0001>
module attributes {stable_mosaic.version = 11 : i64} {
  func.func @_classifier_kernel(%arg0: i32, %arg1: memref<8x128xf32, #tpu.memory_space<vmem>>, %arg2: memref<128x128xf32, #tpu.memory_space<vmem>>, %arg3: memref<1x5xf32, #tpu.memory_space<vmem>>, %arg4: memref<8x5xf32, #tpu.memory_space<vmem>>) attributes {dimension_semantics = [#tpu.dimension_semantics<parallel>], iteration_bounds = array<i64: 1>, scalar_prefetch = 0 : i64, scratch_operands = 0 : i64, tpu.core_type = #tpu.core_type<tc>, window_params = [{transform_indices = @transform_0, window_bounds = array<i64: 8, 128>}, {pipeline_mode = #tpu.pipeline_mode<synchronous>, transform_indices = @transform_1, window_bounds = array<i64: 128, 128>}, {pipeline_mode = #tpu.pipeline_mode<synchronous>, transform_indices = @transform_2, window_bounds = array<i64: 1, 5>}, {transform_indices = @transform_3, window_bounds = array<i64: 8, 5>}]} {
    %c0 = arith.constant 0 : index
    %c0_0 = arith.constant 0 : index
    %0 = vector.load %arg1[%c0, %c0_0] : memref<8x128xf32, #tpu.memory_space<vmem>>, vector<8x128xf32>
    %c0_1 = arith.constant 0 : index
    %c0_2 = arith.constant 0 : index
    %1 = vector.load %arg2[%c0_1, %c0_2] : memref<128x128xf32, #tpu.memory_space<vmem>>, vector<128x128xf32>
    %cst = arith.constant dense<0.000000e+00> : vector<8x128xf32>
    %2 = tpu.matmul %0, %1, %cst {dimension_numbers = #tpu.dot_dimension_numbers<[1], [0], [0], [1], [0, 0, 1, 1], [], []>} : vector<8x128xf32>, vector<128x128xf32>, vector<8x128xf32> -> vector<8x128xf32>
    %3 = vector.extract_strided_slice %2 {offsets = [0, 0], sizes = [8, 5], strides = [1, 1]} : vector<8x128xf32> to vector<8x5xf32>
    %c0_3 = arith.constant 0 : index
    %c0_4 = arith.constant 0 : index
    %4 = vector.load %arg3[%c0_3, %c0_4] : memref<1x5xf32, #tpu.memory_space<vmem>>, vector<1x5xf32>
    %5 = vector.broadcast %4 : vector<1x5xf32> to vector<8x5xf32>
    %6 = arith.addf %3, %5 : vector<8x5xf32>
    %c0_5 = arith.constant 0 : index
    %c0_6 = arith.constant 0 : index
    %7 = vector.load %arg4[%c0_5, %c0_6] : memref<8x5xf32, #tpu.memory_space<vmem>>, vector<8x5xf32>
    tpu.vector_store %arg4[%c0_5, %c0_6], %6 {strides = array<i32>} : memref<8x5xf32, #tpu.memory_space<vmem>>, vector<8x5xf32>,
    return
  }
  func.func @transform_0(%arg0: i32) -> (i32, i32) {
    %c0_i32 = arith.constant 0 : i32
    %c0_i32_0 = arith.constant 0 : i32
    return %arg0, %c0_i32 : i32, i32
  }
  func.func @transform_1(%arg0: i32) -> (i32, i32) {
    %c0_i32 = arith.constant 0 : i32
    %c0_i32_0 = arith.constant 0 : i32
    %c0_i32_1 = arith.constant 0 : i32
    return %c0_i32, %c0_i32_0 : i32, i32
  }
  func.func @transform_2(%arg0: i32) -> (i32, i32) {
    %c0_i32 = arith.constant 0 : i32
    %c0_i32_0 = arith.constant 0 : i32
    %c0_i32_1 = arith.constant 0 : i32
    return %c0_i32, %c0_i32_0 : i32, i32
  }
  func.func @transform_3(%arg0: i32) -> (i32, i32) {
    %c0_i32 = arith.constant 0 : i32
    %c0_i32_0 = arith.constant 0 : i32
    return %arg0, %c0_i32 : i32, i32
  }
}

</mosaic_0001>

<bundles_post_ra>
// kernel: tpu_custom_call.1
= control target key start
LH: loop header
LB: loop body
LE: loop exit
PB: predicated region body
PF: predicated region fallthrough
CT: control target
= control target key end

     0   :  { %8 = vsyncpa [#allocation3], 0  ;;  %s392_s0 = inlined_call_operand.hbm [shape: f32[2,128], index: 0, kind: input, shape index: {}]   ;;  %s393_s1 = inlined_call_operand.hbm [shape: f32[128,128], index: 1, kind: input, shape index: {}]   ;;  %s394_s2 = inlined_call_operand.vmem [shape: f32[1,5], index: 2, kind: input, shape index: {}]   ;;  %s395_s3 = inlined_call_operand.hbm [shape: f32[2,5], index: 3, kind: output, shape index: {}]  }
   0x1   :  { %9 = vsyncpa [#allocation6], 0 }
   0x2   :  { %10 = vsyncpa [#allocation4], 0 }
   0x3   :  { %15 = vsyncadd [#allocation3], 96  ;;  %s317_s12 = smov [#allocation2]   ;;  %s245_s16 = scalar_lea.hbm %s392_s0, 32 }
   0x4   :  { %s16_s13 = sshll.u32 %s317_s12, 4  ;;  %p246_p0 = scmp.ne.s32.totalorder %s392_s0, %s245_s16  ;;  %s17_s13 = int_to_ptr.vmem [resolvable:$true] %s16_s13 }
   0x5   :  { %p249_p1 = scmp.lt.u32.totalorder %s245_s16, %s392_s0 }
   0x7   :  { %p251_p2 = pnand %p249_p1, %p246_p0 }
   0x9   :  { %254 = shalt.err (!%p251_p2)
}
   0xa   :  { %s255_s21 = scalar_lea.vmem %s17_s13, 32  ;;  %s259_s22 = scalar_lea.vmem %s17_s13, 128 }
   0xb   :  { %p256_p3 = scmp.ne.s32.totalorder %s17_s13, %s255_s21  ;;  %p260_p4 = scmp.lt.s32.totalorder %s17_s13, %s17_s13 }
   0xc   :  { %p261_p5 = scmp.lt.s32.totalorder %s259_s22, %s255_s21 }
   0xe   :  { %p262_p6 = por %p261_p5, %p260_p4 }
  0x10   :  { %p263_p7 = pnand %p262_p6, %p256_p3 }
  0x12   :  { %266 = shalt.err (!%p263_p7)
}
  0x13   :  { %s318_s23 = smov 32   ;;  %s319_s24 = smov 2  }
  0x14   :  { %22 = dma.hbm_to_vmem [thread:$0]  %s392_s0, 32, %s17_s13, [#allocation3], %s318_s23, %s318_s23, %s319_s24  }
  0x15   :  { %s320_s27 = smov [#allocation5]   ;;  %s267_s4 = scalar_lea.hbm %s393_s1, 2048 }
  0x16   :  { %s28_s28 = sshll.u32 %s320_s27, 4  ;;  %p268_p8 = scmp.ne.s32.totalorder %s393_s1, %s267_s4  ;;  %s29_s28 = int_to_ptr.vmem [resolvable:$true] %s28_s28 }
  0x17   :  { %p271_p9 = scmp.lt.u32.totalorder %s267_s4, %s393_s1 }
  0x19   :  { %p273_p10 = pnand %p271_p9, %p268_p8 }
  0x1b   :  { %276 = shalt.err (!%p273_p10)
}
  0x1c   :  { %s277_s9 = scalar_lea.vmem %s29_s28, 2048  ;;  %p282_p12 = scmp.lt.s32.totalorder %s29_s28, %s29_s28 }
  0x1d   :  { %p278_p11 = scmp.ne.s32.totalorder %s29_s28, %s277_s9  ;;  %p283_p13 = scmp.lt.s32.totalorder %s277_s9, %s277_s9 }
  0x1f   :  { %p284_p0 = por %p283_p13, %p282_p12 }
  0x21   :  { %p285_p1 = pnand %p284_p0, %p278_p11 }
  0x23   :  { %288 = shalt.err (!%p285_p1)
}
  0x24   :  { %s321_s0 = smov 128   ;;  %s322_s10 = smov 8  }
  0x25   :  { %34 = dma.hbm_to_vmem [thread:$0]  %s393_s1, 2048, %s29_s28, [#allocation6], %s321_s0, %s321_s0, %s322_s10  }
  0x26   :  { %311 = dma.done.wait [#allocation3], 128  }
  0x27   :  { %312 = vsyncadd [#allocation3], 4294967168 }
  0x28   :  { %313 = dma.done.wait [#allocation6], 2048  }
  0x29   :  { %314 = vsyncadd [#allocation6], 4294965248  ;;  %v323_v0 = vmov 0.0|0.0   ;;  %vm324_vm0 = vmmov 0   ;;  %v325_v1 = vmov 0.0   ;;  %v44_v2 = vld [vmem:[#allocation5] sm:$0xff] }
  0x2a   :  { %211 = vmatprep.subr.bf16.mxu0 %v323_v0  ;;  %208 = vmatprep.mubr.msk.f32.mxu0 %vm324_vm0, %v325_v1  ;;  %v45_v3 = vld [vmem:[#allocation5 + $0x8] sm:$0xff]  ;;  %v46_v4 = vld [vmem:[#allocation5 + $0x10] sm:$0xff]  ;;  %v47_v6 = vld [vmem:[#allocation5 + $0x18] sm:$0xff]  ;;  %vm138_vm1 = vcmask 39936  }
  0x2b   :  { %v212_v5 = vpack.c.bf16 %v45_v3, %v44_v2  ;;  %v215_v7 = vpack.c.bf16 %v47_v6, %v46_v4  ;;  %v48_v8 = vld [vmem:[#allocation5 + $0x20] sm:$0xff]  ;;  %v49_v9 = vld [vmem:[#allocation5 + $0x28] sm:$0xff]  ;;  %v50_v11 = vld [vmem:[#allocation5 + $0x30] sm:$0xff] }
  0x2c   :  { %v218_v10 = vpack.c.bf16 %v49_v9, %v48_v8  ;;  %v51_v12 = vld [vmem:[#allocation5 + $0x38] sm:$0xff]  ;;  %v52_v14 = vld [vmem:[#allocation5 + $0x40] sm:$0xff]  ;;  %v53_v15 = vld [vmem:[#allocation5 + $0x48] sm:$0xff] }
  0x2d   :  { %213 = vmatpush3.bf16.msra.mxu0 %v212_v5  ;;  %v221_v13 = vpack.c.bf16 %v51_v12, %v50_v11  ;;  %v224_v16 = vpack.c.bf16 %v53_v15, %v52_v14  ;;  %v54_v17 = vld [vmem:[#allocation5 + $0x50] sm:$0xff]  ;;  %v55_v18 = vld [vmem:[#allocation5 + $0x58] sm:$0xff]  ;;  %v56_v20 = vld [vmem:[#allocation5 + $0x60] sm:$0xff] }
  0x2e   :  { %214 = vmatprep.subr.bf16.mxu0 %v323_v0  ;;  %v227_v19 = vpack.c.bf16 %v55_v18, %v54_v17  ;;  %v57_v21 = vld [vmem:[#allocation5 + $0x68] sm:$0xff]  ;;  %v58_v23 = vld [vmem:[#allocation5 + $0x70] sm:$0xff]  ;;  %v59_v24 = vld [vmem:[#allocation5 + $0x78] sm:$0xff] }
  0x2f   :  { %v230_v22 = vpack.c.bf16 %v57_v21, %v56_v20  ;;  %v233_v25 = vpack.c.bf16 %v59_v24, %v58_v23  ;;  %v43_v26 = vld [vmem:[#allocation2] sm:$0xff] }
  0x30   :  { %v158_v27 = vld [vmem:[%s394_s2] ss:$0 sm:$0xff] }
  0x31   :  { %216 = vmatpush3.bf16.msra.mxu0 %v215_v7 }
  0x32   :  { %217 = vmatprep.subr.bf16.mxu0 %v323_v0 }
  0x35   :  { %219 = vmatpush3.bf16.msra.mxu0 %v218_v10 }
  0x36   :  { %220 = vmatprep.subr.bf16.mxu0 %v323_v0 }
  0x39   :  { %222 = vmatpush3.bf16.msra.mxu0 %v221_v13 }
  0x3a   :  { %223 = vmatprep.subr.bf16.mxu0 %v323_v0 }
  0x3d   :  { %225 = vmatpush3.bf16.msra.mxu0 %v224_v16 }
  0x3e   :  { %226 = vmatprep.subr.bf16.mxu0 %v323_v0 }
  0x41   :  { %228 = vmatpush3.bf16.msra.mxu0 %v227_v19 }
  0x42   :  { %229 = vmatprep.subr.bf16.mxu0 %v323_v0 }
  0x45   :  { %231 = vmatpush3.bf16.msra.mxu0 %v230_v22 }
  0x46   :  { %232 = vmatprep.subr.bf16.mxu0 %v323_v0 }
  0x49   :  { %234 = vmatpush3.bf16.msra.mxu0 %v233_v25 }
  0x4c   :  { %209 = vmatmul.mubr.f32.vlgmr.msra.gmra.mrb[0].mxu0 %v43_v26 }
 0x11f   :  { %v126_v28 = vpop.f32.mrb[0].mxu0 }
 0x120   :  { %v137_v29 = vadd.f32 %v158_v27, %v126_v28  ;;  %v210_v30 = vpop.f32.mrb[1].mxu0 }
 0x122   :  { %139 = vst.msk [vmem:[#allocation7] sm:$0xff] %vm138_vm1, %v137_v29 }
 0x123   :  { %144 = vsyncadd [#allocation4], 96  ;;  %s326_s14 = smov [#allocation7]  }
 0x124   :  { %s145_s15 = sshll.u32 %s326_s14, 4  ;;  %s146_s15 = int_to_ptr.vmem [resolvable:$true] %s145_s15 }
 0x125   :  { %s289_s16 = scalar_lea.vmem %s146_s15, 32  ;;  %s293_s17 = scalar_lea.vmem %s146_s15, 128 }
 0x126   :  { %p290_p2 = scmp.ne.s32.totalorder %s146_s15, %s289_s16  ;;  %p294_p3 = scmp.lt.s32.totalorder %s146_s15, %s146_s15 }
 0x127   :  { %p295_p4 = scmp.lt.s32.totalorder %s293_s17, %s289_s16 }
 0x129   :  { %p296_p5 = por %p295_p4, %p294_p3 }
 0x12b   :  { %p297_p6 = pnand %p296_p5, %p290_p2 }
 0x12d   :  { %300 = shalt.err (!%p297_p6)
}
 0x12e   :  { %s301_s2 = scalar_lea.hbm %s395_s3, 32 }
 0x12f   :  { %p302_p7 = scmp.ne.s32.totalorder %s395_s3, %s301_s2  ;;  %p305_p8 = scmp.lt.u32.totalorder %s301_s2, %s395_s3 }
 0x131   :  { %p307_p9 = pnand %p305_p8, %p302_p7 }
 0x133   :  { %310 = shalt.err (!%p307_p9)
}
 0x134   :  { %151 = dma.vmem_to_hbm [thread:$0]  %s146_s15, 32, %s395_s3, [#allocation4], %s318_s23, %s318_s23, %s319_s24  }
 0x135   :  { %315 = dma.done.wait [#allocation4], 128  }
 0x136   :  { %316 = vsyncadd [#allocation4], 4294967168 }
 0x137   :  { %155 = vsyncpa [#allocation3], 1 }
 0x138   :  { %156 = vsyncpa [#allocation6], 1 }
 0x139   :  { %157 = vsyncpa [#allocation4], 1 }

</bundles_post_ra>
